<compile_context>
chip_gen: v6e
topology: v6e:2x2x1
jax: 0.10.0
libtpu: 0.0.40
codegen_flags: <defaults>
</compile_context>

<pallas_src>
import functools

import jax
import jax.numpy as jnp
from jax.experimental import pallas as pl
from jax.experimental.pallas import tpu as pltpu

CIN, COUT, KH, KW = 8, 8, 4, 4
STRIDE, PAD, OUT_PAD = 2, 1, 1


def _convt_silu_kernel(wm_ref, b_ref, x_ref, halo_ref, o_ref, *, ts, swp):
    """One batch element x one tile of `ts` super-pixel rows.

    wm_ref  : (4*COUT, 4*CIN) bf16  relaid weight, rows=(dc,dr,co), cols=(jc,jr,ci)
    b_ref   : (4*COUT, 1)     f32   bias tiled over the 4 output phases
    x_ref   : (ts*CIN, wp)    bf16  padded rows [t*ts, (t+1)*ts), channel-minor
    halo_ref: (CIN, wp)       bf16  padded row (t+1)*ts  (1-row halo)
    o_ref   : (2, 2*ts*COUT, swp) bf16  W-parity separated, rows=(out_row, co)
    """
    wm = wm_ref[...]            # (32, 32) bf16, stays resident
    bias = b_ref[...]           # (32, 1)  f32

    for i in range(ts):                                   # static unroll
        # Contiguous 2-row slab (rows i, i+1) in bf16, rows ordered (jr, ci).
        if i < ts - 1:
            s2 = x_ref[pl.ds(i * CIN, 2 * CIN)]           # (2*CIN, wp)
        else:
            s2 = jnp.concatenate(
                [x_ref[pl.ds((ts - 1) * CIN, CIN)], halo_ref[...]], axis=0)
        # im2col with K ordered (jc, jr, ci): unshifted + one-lane-shifted view.
        xi = jnp.concatenate([s2[:, 0:swp], s2[:, 1:swp + 1]], axis=0)  # (32, swp) bf16
        acc = jnp.dot(wm, xi, preferred_element_type=jnp.float32)       # MXU (32, swp) f32
        v = acc + bias
        y = (v * jax.nn.sigmoid(v)).astype(o_ref.dtype)                 # SiLU in f32 -> bf16
        for dc in range(2):                                # W-parity plane
            # 16 consecutive (dr, co) rows -> full-vreg, lane-dense bf16 store.
            o_ref[dc, pl.ds(i * 2 * COUT, 2 * COUT)] = (
                y[dc * 2 * COUT:(dc + 1) * 2 * COUT])


@functools.partial(jax.jit, static_argnames=("tile_rows", "out_dtype"))
def conv_transpose_silu(x, w_t, b, *, tile_rows=16, out_dtype=jnp.float32):
    """x: (N, CIN, H, W) f32.  w_t: ConvTranspose2d weight (CIN, COUT, KH, KW)."""
    n, cin, h, w = x.shape
    assert cin == CIN
    ho = (h - 1) * STRIDE - 2 * PAD + KH + OUT_PAD    # = 2H + 1
    wo = (w - 1) * STRIDE - 2 * PAD + KW + OUT_PAD    # = 2W + 1

    sh = h + 1                                        # super-pixel rows
    sw = w + 1                                        # super-pixel cols
    swp = ((sw + 127) // 128) * 128                   # lane-pad to 128 (dense stores)
    wp = swp + 1                                      # padded input width (cols j, j+1)
    ts = tile_rows
    num_tiles = pl.cdiv(sh, ts)
    hp = (num_tiles + 1) * ts                         # padded rows (halo room)
    hop = 2 * ts * num_tiles                          # padded output rows

    # ---- glue (single fused XLA pass): layout, zero pad, bf16 cast ----
    xt = jnp.transpose(x, (0, 2, 1, 3))                               # (N, H, CIN, W)
    xt = jnp.pad(xt, ((0, 0), (1, hp - h - 1), (0, 0), (1, wp - w - 1)))
    xt = xt.astype(jnp.bfloat16).reshape(n, hp * CIN, wp)             # (N, Hp*CIN, Wp)

    # Weight relayout: Wm[(dc,dr,co),(jc,jr,ci)] = w_t[ci,co, dr+2-2jr, dc+2-2jc]
    row_blocks = []
    for dc in range(2):
        for dr in range(2):
            col_blocks = []
            for jc in range(2):
                for jr in range(2):
                    col_blocks.append(w_t[:, :, dr + 2 - 2 * jr, dc + 2 - 2 * jc].T)
            row_blocks.append(jnp.concatenate(col_blocks, axis=1))    # (COUT, 4*CIN)
    wm = jnp.concatenate(row_blocks, axis=0).astype(jnp.bfloat16)     # (32, 32)
    bias = jnp.tile(b.astype(jnp.float32), 4).reshape(4 * COUT, 1)    # (32, 1)

    cost = pl.CostEstimate(
        flops=2 * n * (hop // 2) * (4 * COUT) * (4 * CIN) * swp,
        transcendentals=n * 2 * hop * COUT * swp,
        bytes_accessed=n * hp * CIN * wp * 2 + n * 2 * hop * COUT * swp * 2)

    kernel = functools.partial(_convt_silu_kernel, ts=ts, swp=swp)
    out_sep = pl.pallas_call(
        kernel,
        out_shape=jax.ShapeDtypeStruct((n, 2, hop * COUT, swp), jnp.bfloat16),
        grid=(n, num_tiles),
        in_specs=[
            pl.BlockSpec((4 * COUT, 4 * CIN), lambda i, t: (0, 0)),    # weight (VMEM)
            pl.BlockSpec((4 * COUT, 1), lambda i, t: (0, 0)),          # bias   (VMEM)
            pl.BlockSpec((pl.Squeezed(), ts * CIN, wp),
                         lambda i, t: (i, t, 0)),                      # input tile
            pl.BlockSpec((pl.Squeezed(), CIN, wp),
                         lambda i, t: (i, (t + 1) * ts, 0)),           # 1-row halo
        ],
        out_specs=pl.BlockSpec((pl.Squeezed(), 2, 2 * ts * COUT, swp),
                               lambda i, t: (i, 0, t, 0)),
        compiler_params=pltpu.CompilerParams(
            dimension_semantics=("parallel", "parallel"),
            vmem_limit_bytes=48 * 1024 * 1024),
        cost_estimate=cost,
    )(wm, bias, xt, xt)

    # One fused pass: split (row, co), transpose to NCHW, interleave W parities, crop.
    out = out_sep.reshape(n, 2, hop, COUT, swp)
    out = jnp.transpose(out, (0, 3, 2, 4, 1))          # (N, COUT, HOp, SWp, 2)
    out = out.reshape(n, COUT, hop, 2 * swp)           # interleave the 2 W parities
    return out[:, :, 1:ho + 1, 1:wo + 1].astype(out_dtype)


def _reference(x, w_t, b):
    """Pure-JAX reference: XLA conv with lhs dilation == transposed conv, + SiLU."""
    w_conv = jnp.flip(jnp.transpose(w_t, (1, 0, 2, 3)), axis=(2, 3))
    lo = KH - 1 - PAD
    hi = lo + OUT_PAD
    v1 = jax.lax.conv_general_dilated(
        x, w_conv, window_strides=(1, 1),
        padding=((lo, hi), (lo, hi)),
        lhs_dilation=(STRIDE, STRIDE),
        dimension_numbers=("NCHW", "OIHW", "NCHW"))
    v1 = v1 + b[None, :, None, None]
    return v1 * jax.nn.sigmoid(v1)


if __name__ == "__main__":
    key = jax.random.PRNGKey(0)
    k_x, k_w, k_b = jax.random.split(key, 3)

    # Small shapes consistent with the module (original was (1, 8, 2048, 2048)).
    N, H, W = 2, 16, 16
    x = jax.random.normal(k_x, (N, CIN, H, W), dtype=jnp.float32)
    fan = CIN * KH * KW
    bound = 1.0 / jnp.sqrt(float(fan))
    w_t = jax.random.uniform(k_w, (CIN, COUT, KH, KW), jnp.float32, -bound, bound)
    b = jax.random.uniform(k_b, (COUT,), jnp.float32, -bound, bound)

    out = jax.block_until_ready(conv_transpose_silu(x, w_t, b, tile_rows=8))
    ref = _reference(x, w_t, b)
    assert out.shape == (N, COUT, 2 * H + 1, 2 * W + 1), out.shape
    err = float(jnp.max(jnp.abs(out - ref)))
    assert jnp.allclose(out, ref, atol=3e-2, rtol=3e-2), err

    # Odd / non-aligned shapes exercise the halo, multi-tile and edge handling.
    x2 = jax.random.normal(k_x, (1, CIN, 5, 7), dtype=jnp.float32)
    out2 = jax.block_until_ready(conv_transpose_silu(x2, w_t, b, tile_rows=4))
    ref2 = _reference(x2, w_t, b)
    assert out2.shape == (1, COUT, 11, 15), out2.shape
    err2 = float(jnp.max(jnp.abs(out2 - ref2)))
    assert jnp.allclose(out2, ref2, atol=3e-2, rtol=3e-2), err2

    print("KERNEL_OK")
</pallas_src>

<mosaic_0001>
module attributes {stable_mosaic.version = 11 : i64} {
  func.func @_convt_silu_kernel(%arg0: i32, %arg1: i32, %arg2: memref<32x32xbf16, #tpu.memory_space<vmem>>, %arg3: memref<32x1xf32, #tpu.memory_space<vmem>>, %arg4: memref<1x64x129xbf16, #tpu.memory_space<vmem>>, %arg5: memref<1x8x129xbf16, #tpu.memory_space<vmem>>, %arg6: memref<1x2x128x128xbf16, #tpu.memory_space<vmem>>) attributes {dimension_semantics = [#tpu.dimension_semantics<parallel>, #tpu.dimension_semantics<parallel>], iteration_bounds = array<i64: 2, 3>, scalar_prefetch = 0 : i64, scratch_operands = 0 : i64, tpu.core_type = #tpu.core_type<tc>, window_params = [{pipeline_mode = #tpu.pipeline_mode<synchronous>, transform_indices = @transform_0, window_bounds = array<i64: 32, 32>}, {pipeline_mode = #tpu.pipeline_mode<synchronous>, transform_indices = @transform_1, window_bounds = array<i64: 32, 1>}, {transform_indices = @transform_2, window_bounds = array<i64: 1, 64, 129>}, {transform_indices = @transform_3, window_bounds = array<i64: 1, 8, 129>}, {transform_indices = @transform_4, window_bounds = array<i64: 1, 2, 128, 128>}]} {
    %c0 = arith.constant 0 : index
    %c0_0 = arith.constant 0 : index
    %0 = vector.load %arg2[%c0, %c0_0] : memref<32x32xbf16, #tpu.memory_space<vmem>>, vector<32x32xbf16>
    %c0_1 = arith.constant 0 : index
    %c0_2 = arith.constant 0 : index
    %1 = vector.load %arg3[%c0_1, %c0_2] : memref<32x1xf32, #tpu.memory_space<vmem>>, vector<32x1xf32>
    %c0_3 = arith.constant 0 : index
    %c0_4 = arith.constant 0 : index
    %c0_5 = arith.constant 0 : index
    %2 = vector.load %arg4[%c0_3, %c0_4, %c0_5] : memref<1x64x129xbf16, #tpu.memory_space<vmem>>, vector<1x16x129xbf16>
    %3 = vector.shape_cast %2 : vector<1x16x129xbf16> to vector<16x129xbf16>
    %4 = vector.extract_strided_slice %3 {offsets = [0, 0], sizes = [16, 128], strides = [1, 1]} : vector<16x129xbf16> to vector<16x128xbf16>
    %5 = vector.extract_strided_slice %3 {offsets = [0, 1], sizes = [16, 128], strides = [1, 1]} : vector<16x129xbf16> to vector<16x128xbf16>
    %6 = tpu.concatenate %4, %5 in 0 : vector<16x128xbf16>, vector<16x128xbf16> -> vector<32x128xbf16>
    %cst = arith.constant dense<0.000000e+00> : vector<32x128xf32>
    %7 = tpu.matmul %0, %6, %cst {dimension_numbers = #tpu.dot_dimension_numbers<[1], [0], [0], [1], [0, 0, 1, 1], [], []>} : vector<32x32xbf16>, vector<32x128xbf16>, vector<32x128xf32> -> vector<32x128xf32>
    %8 = vector.broadcast %1 : vector<32x1xf32> to vector<32x128xf32>
    %9 = arith.addf %7, %8 : vector<32x128xf32>
    %10 = arith.negf %9 : vector<32x128xf32>
    %11 = math.exp %10 : vector<32x128xf32>
    %cst_6 = arith.constant 1.000000e+00 : f32
    %12 = vector.broadcast %cst_6 : f32 to vector<32x128xf32>
    %13 = arith.addf %12, %11 : vector<32x128xf32>
    %14 = arith.divf %12, %13 : vector<32x128xf32>
    %15 = arith.mulf %9, %14 : vector<32x128xf32>
    %16 = arith.truncf %15 : vector<32x128xf32> to vector<32x128xbf16>
    %17 = vector.extract_strided_slice %16 {offsets = [0, 0], sizes = [16, 128], strides = [1, 1]} : vector<32x128xbf16> to vector<16x128xbf16>
    %c0_7 = arith.constant 0 : index
    %c0_8 = arith.constant 0 : index
    %c0_9 = arith.constant 0 : index
    %c0_10 = arith.constant 0 : index
    %18 = vector.load %arg6[%c0_7, %c0_8, %c0_9, %c0_10] : memref<1x2x128x128xbf16, #tpu.memory_space<vmem>>, vector<1x1x16x128xbf16>
    %19 = vector.shape_cast %18 : vector<1x1x16x128xbf16> to vector<16x128xbf16>
    %20 = vector.shape_cast %17 : vector<16x128xbf16> to vector<1x1x16x128xbf16>
    tpu.vector_store %arg6[%c0_7, %c0_8, %c0_9, %c0_10], %20 {strides = array<i32>} : memref<1x2x128x128xbf16, #tpu.memory_space<vmem>>, vector<1x1x16x128xbf16>,
    %21 = vector.extract_strided_slice %16 {offsets = [16, 0], sizes = [16, 128], strides = [1, 1]} : vector<32x128xbf16> to vector<16x128xbf16>
    %c0_11 = arith.constant 0 : index
    %c1 = arith.constant 1 : index
    %c0_12 = arith.constant 0 : index
    %c0_13 = arith.constant 0 : index
    %22 = vector.load %arg6[%c0_11, %c1, %c0_12, %c0_13] : memref<1x2x128x128xbf16, #tpu.memory_space<vmem>>, vector<1x1x16x128xbf16>
    %23 = vector.shape_cast %22 : vector<1x1x16x128xbf16> to vector<16x128xbf16>
    %24 = vector.shape_cast %21 : vector<16x128xbf16> to vector<1x1x16x128xbf16>
    tpu.vector_store %arg6[%c0_11, %c1, %c0_12, %c0_13], %24 {strides = array<i32>} : memref<1x2x128x128xbf16, #tpu.memory_space<vmem>>, vector<1x1x16x128xbf16>,
    %c0_14 = arith.constant 0 : index
    %c8 = arith.constant 8 : index
    %c0_15 = arith.constant 0 : index
    %25 = vector.load %arg4[%c0_14, %c8, %c0_15] : memref<1x64x129xbf16, #tpu.memory_space<vmem>>, vector<1x16x129xbf16>
    %26 = vector.shape_cast %25 : vector<1x16x129xbf16> to vector<16x129xbf16>
    %27 = vector.extract_strided_slice %26 {offsets = [0, 0], sizes = [16, 128], strides = [1, 1]} : vector<16x129xbf16> to vector<16x128xbf16>
    %28 = vector.extract_strided_slice %26 {offsets = [0, 1], sizes = [16, 128], strides = [1, 1]} : vector<16x129xbf16> to vector<16x128xbf16>
    %29 = tpu.concatenate %27, %28 in 0 : vector<16x128xbf16>, vector<16x128xbf16> -> vector<32x128xbf16>
    %cst_16 = arith.constant dense<0.000000e+00> : vector<32x128xf32>
    %30 = tpu.matmul %0, %29, %cst_16 {dimension_numbers = #tpu.dot_dimension_numbers<[1], [0], [0], [1], [0, 0, 1, 1], [], []>} : vector<32x32xbf16>, vector<32x128xbf16>, vector<32x128xf32> -> vector<32x128xf32>
    %31 = vector.broadcast %1 : vector<32x1xf32> to vector<32x128xf32>
    %32 = arith.addf %30, %31 : vector<32x128xf32>
    %33 = arith.negf %32 : vector<32x128xf32>
    %34 = math.exp %33 : vector<32x128xf32>
    %cst_17 = arith.constant 1.000000e+00 : f32
    %35 = vector.broadcast %cst_17 : f32 to vector<32x128xf32>
    %36 = arith.addf %35, %34 : vector<32x128xf32>
    %37 = arith.divf %35, %36 : vector<32x128xf32>
    %38 = arith.mulf %32, %37 : vector<32x128xf32>
    %39 = arith.truncf %38 : vector<32x128xf32> to vector<32x128xbf16>
    %40 = vector.extract_strided_slice %39 {offsets = [0, 0], sizes = [16, 128], strides = [1, 1]} : vector<32x128xbf16> to vector<16x128xbf16>
    %c0_18 = arith.constant 0 : index
    %c0_19 = arith.constant 0 : index
    %c16 = arith.constant 16 : index
    %c0_20 = arith.constant 0 : index
    %41 = vector.load %arg6[%c0_18, %c0_19, %c16, %c0_20] : memref<1x2x128x128xbf16, #tpu.memory_space<vmem>>, vector<1x1x16x128xbf16>
    %42 = vector.shape_cast %41 : vector<1x1x16x128xbf16> to vector<16x128xbf16>
    %43 = vector.shape_cast %40 : vector<16x128xbf16> to vector<1x1x16x128xbf16>
    tpu.vector_store %arg6[%c0_18, %c0_19, %c16, %c0_20], %43 {strides = array<i32>} : memref<1x2x128x128xbf16, #tpu.memory_space<vmem>>, vector<1x1x16x128xbf16>,
    %44 = vector.extract_strided_slice %39 {offsets = [16, 0], sizes = [16, 128], strides = [1, 1]} : vector<32x128xbf16> to vector<16x128xbf16>
    %c0_21 = arith.constant 0 : index
    %c1_22 = arith.constant 1 : index
    %c16_23 = arith.constant 16 : index
    %c0_24 = arith.constant 0 : index
    %45 = vector.load %arg6[%c0_21, %c1_22, %c16_23, %c0_24] : memref<1x2x128x128xbf16, #tpu.memory_space<vmem>>, vector<1x1x16x128xbf16>
    %46 = vector.shape_cast %45 : vector<1x1x16x128xbf16> to vector<16x128xbf16>
    %47 = vector.shape_cast %44 : vector<16x128xbf16> to vector<1x1x16x128xbf16>
    tpu.vector_store %arg6[%c0_21, %c1_22, %c16_23, %c0_24], %47 {strides = array<i32>} : memref<1x2x128x128xbf16, #tpu.memory_space<vmem>>, vector<1x1x16x128xbf16>,
    %c0_25 = arith.constant 0 : index
    %c16_26 = arith.constant 16 : index
    %c0_27 = arith.constant 0 : index
    %48 = vector.load %arg4[%c0_25, %c16_26, %c0_27] : memref<1x64x129xbf16, #tpu.memory_space<vmem>>, vector<1x16x129xbf16>
    %49 = vector.shape_cast %48 : vector<1x16x129xbf16> to vector<16x129xbf16>
    %50 = vector.extract_strided_slice %49 {offsets = [0, 0], sizes = [16, 128], strides = [1, 1]} : vector<16x129xbf16> to vector<16x128xbf16>
    %51 = vector.extract_strided_slice %49 {offsets = [0, 1], sizes = [16, 128], strides = [1, 1]} : vector<16x129xbf16> to vector<16x128xbf16>
    %52 = tpu.concatenate %50, %51 in 0 : vector<16x128xbf16>, vector<16x128xbf16> -> vector<32x128xbf16>
    %cst_28 = arith.constant dense<0.000000e+00> : vector<32x128xf32>
    %53 = tpu.matmul %0, %52, %cst_28 {dimension_numbers = #tpu.dot_dimension_numbers<[1], [0], [0], [1], [0, 0, 1, 1], [], []>} : vector<32x32xbf16>, vector<32x128xbf16>, vector<32x128xf32> -> vector<32x128xf32>
    %54 = vector.broadcast %1 : vector<32x1xf32> to vector<32x128xf32>
    %55 = arith.addf %53, %54 : vector<32x128xf32>
    %56 = arith.negf %55 : vector<32x128xf32>
    %57 = math.exp %56 : vector<32x128xf32>
    %cst_29 = arith.constant 1.000000e+00 : f32
    %58 = vector.broadcast %cst_29 : f32 to vector<32x128xf32>
    %59 = arith.addf %58, %57 : vector<32x128xf32>
    %60 = arith.divf %58, %59 : vector<32x128xf32>
    %61 = arith.mulf %55, %60 : vector<32x128xf32>
    %62 = arith.truncf %61 : vector<32x128xf32> to vector<32x128xbf16>
    %63 = vector.extract_strided_slice %62 {offsets = [0, 0], sizes = [16, 128], strides = [1, 1]} : vector<32x128xbf16> to vector<16x128xbf16>
    %c0_30 = arith.constant 0 : index
    %c0_31 = arith.constant 0 : index
    %c32 = arith.constant 32 : index
    %c0_32 = arith.constant 0 : index
    %64 = vector.load %arg6[%c0_30, %c0_31, %c32, %c0_32] : memref<1x2x128x128xbf16, #tpu.memory_space<vmem>>, vector<1x1x16x128xbf16>
    %65 = vector.shape_cast %64 : vector<1x1x16x128xbf16> to vector<16x128xbf16>
    %66 = vector.shape_cast %63 : vector<16x128xbf16> to vector<1x1x16x128xbf16>
    tpu.vector_store %arg6[%c0_30, %c0_31, %c32, %c0_32], %66 {strides = array<i32>} : memref<1x2x128x128xbf16, #tpu.memory_space<vmem>>, vector<1x1x16x128xbf16>,
    %67 = vector.extract_strided_slice %62 {offsets = [16, 0], sizes = [16, 128], strides = [1, 1]} : vector<32x128xbf16> to vector<16x128xbf16>
    %c0_33 = arith.constant 0 : index
    %c1_34 = arith.constant 1 : index
    %c32_35 = arith.constant 32 : index
    %c0_36 = arith.constant 0 : index
    %68 = vector.load %arg6[%c0_33, %c1_34, %c32_35, %c0_36] : memref<1x2x128x128xbf16, #tpu.memory_space<vmem>>, vector<1x1x16x128xbf16>
    %69 = vector.shape_cast %68 : vector<1x1x16x128xbf16> to vector<16x128xbf16>
    %70 = vector.shape_cast %67 : vector<16x128xbf16> to vector<1x1x16x128xbf16>
    tpu.vector_store %arg6[%c0_33, %c1_34, %c32_35, %c0_36], %70 {strides = array<i32>} : memref<1x2x128x128xbf16, #tpu.memory_space<vmem>>, vector<1x1x16x128xbf16>,
    %c0_37 = arith.constant 0 : index
    %c24 = arith.constant 24 : index
    %c0_38 = arith.constant 0 : index
    %71 = vector.load %arg4[%c0_37, %c24, %c0_38] : memref<1x64x129xbf16, #tpu.memory_space<vmem>>, vector<1x16x129xbf16>
    %72 = vector.shape_cast %71 : vector<1x16x129xbf16> to vector<16x129xbf16>
    %73 = vector.extract_strided_slice %72 {offsets = [0, 0], sizes = [16, 128], strides = [1, 1]} : vector<16x129xbf16> to vector<16x128xbf16>
    %74 = vector.extract_strided_slice %72 {offsets = [0, 1], sizes = [16, 128], strides = [1, 1]} : vector<16x129xbf16> to vector<16x128xbf16>
    %75 = tpu.concatenate %73, %74 in 0 : vector<16x128xbf16>, vector<16x128xbf16> -> vector<32x128xbf16>
    %cst_39 = arith.constant dense<0.000000e+00> : vector<32x128xf32>
    %76 = tpu.matmul %0, %75, %cst_39 {dimension_numbers = #tpu.dot_dimension_numbers<[1], [0], [0], [1], [0, 0, 1, 1], [], []>} : vector<32x32xbf16>, vector<32x128xbf16>, vector<32x128xf32> -> vector<32x128xf32>
    %77 = vector.broadcast %1 : vector<32x1xf32> to vector<32x128xf32>
    %78 = arith.addf %76, %77 : vector<32x128xf32>
    %79 = arith.negf %78 : vector<32x128xf32>
    %80 = math.exp %79 : vector<32x128xf32>
    %cst_40 = arith.constant 1.000000e+00 : f32
    %81 = vector.broadcast %cst_40 : f32 to vector<32x128xf32>
    %82 = arith.addf %81, %80 : vector<32x128xf32>
    %83 = arith.divf %81, %82 : vector<32x128xf32>
    %84 = arith.mulf %78, %83 : vector<32x128xf32>
    %85 = arith.truncf %84 : vector<32x128xf32> to vector<32x128xbf16>
    %86 = vector.extract_strided_slice %85 {offsets = [0, 0], sizes = [16, 128], strides = [1, 1]} : vector<32x128xbf16> to vector<16x128xbf16>
    %c0_41 = arith.constant 0 : index
    %c0_42 = arith.constant 0 : index
    %c48 = arith.constant 48 : index
    %c0_43 = arith.constant 0 : index
    %87 = vector.load %arg6[%c0_41, %c0_42, %c48, %c0_43] : memref<1x2x128x128xbf16, #tpu.memory_space<vmem>>, vector<1x1x16x128xbf16>
    %88 = vector.shape_cast %87 : vector<1x1x16x128xbf16> to vector<16x128xbf16>
    %89 = vector.shape_cast %86 : vector<16x128xbf16> to vector<1x1x16x128xbf16>
    tpu.vector_store %arg6[%c0_41, %c0_42, %c48, %c0_43], %89 {strides = array<i32>} : memref<1x2x128x128xbf16, #tpu.memory_space<vmem>>, vector<1x1x16x128xbf16>,
    %90 = vector.extract_strided_slice %85 {offsets = [16, 0], sizes = [16, 128], strides = [1, 1]} : vector<32x128xbf16> to vector<16x128xbf16>
    %c0_44 = arith.constant 0 : index
    %c1_45 = arith.constant 1 : index
    %c48_46 = arith.constant 48 : index
    %c0_47 = arith.constant 0 : index
    %91 = vector.load %arg6[%c0_44, %c1_45, %c48_46, %c0_47] : memref<1x2x128x128xbf16, #tpu.memory_space<vmem>>, vector<1x1x16x128xbf16>
    %92 = vector.shape_cast %91 : vector<1x1x16x128xbf16> to vector<16x128xbf16>
    %93 = vector.shape_cast %90 : vector<16x128xbf16> to vector<1x1x16x128xbf16>
    tpu.vector_store %arg6[%c0_44, %c1_45, %c48_46, %c0_47], %93 {strides = array<i32>} : memref<1x2x128x128xbf16, #tpu.memory_space<vmem>>, vector<1x1x16x128xbf16>,
    %c0_48 = arith.constant 0 : index
    %c32_49 = arith.constant 32 : index
    %c0_50 = arith.constant 0 : index
    %94 = vector.load %arg4[%c0_48, %c32_49, %c0_50] : memref<1x64x129xbf16, #tpu.memory_space<vmem>>, vector<1x16x129xbf16>
    %95 = vector.shape_cast %94 : vector<1x16x129xbf16> to vector<16x129xbf16>
    %96 = vector.extract_strided_slice %95 {offsets = [0, 0], sizes = [16, 128], strides = [1, 1]} : vector<16x129xbf16> to vector<16x128xbf16>
    %97 = vector.extract_strided_slice %95 {offsets = [0, 1], sizes = [16, 128], strides = [1, 1]} : vector<16x129xbf16> to vector<16x128xbf16>
    %98 = tpu.concatenate %96, %97 in 0 : vector<16x128xbf16>, vector<16x128xbf16> -> vector<32x128xbf16>
    %cst_51 = arith.constant dense<0.000000e+00> : vector<32x128xf32>
    %99 = tpu.matmul %0, %98, %cst_51 {dimension_numbers = #tpu.dot_dimension_numbers<[1], [0], [0], [1], [0, 0, 1, 1], [], []>} : vector<32x32xbf16>, vector<32x128xbf16>, vector<32x128xf32> -> vector<32x128xf32>
    %100 = vector.broadcast %1 : vector<32x1xf32> to vector<32x128xf32>
    %101 = arith.addf %99, %100 : vector<32x128xf32>
    %102 = arith.negf %101 : vector<32x128xf32>
    %103 = math.exp %102 : vector<32x128xf32>
    %cst_52 = arith.constant 1.000000e+00 : f32
    %104 = vector.broadcast %cst_52 : f32 to vector<32x128xf32>
    %105 = arith.addf %104, %103 : vector<32x128xf32>
    %106 = arith.divf %104, %105 : vector<32x128xf32>
    %107 = arith.mulf %101, %106 : vector<32x128xf32>
    %108 = arith.truncf %107 : vector<32x128xf32> to vector<32x128xbf16>
    %109 = vector.extract_strided_slice %108 {offsets = [0, 0], sizes = [16, 128], strides = [1, 1]} : vector<32x128xbf16> to vector<16x128xbf16>
    %c0_53 = arith.constant 0 : index
    %c0_54 = arith.constant 0 : index
    %c64 = arith.constant 64 : index
    %c0_55 = arith.constant 0 : index
    %110 = vector.load %arg6[%c0_53, %c0_54, %c64, %c0_55] : memref<1x2x128x128xbf16, #tpu.memory_space<vmem>>, vector<1x1x16x128xbf16>
    %111 = vector.shape_cast %110 : vector<1x1x16x128xbf16> to vector<16x128xbf16>
    %112 = vector.shape_cast %109 : vector<16x128xbf16> to vector<1x1x16x128xbf16>
    tpu.vector_store %arg6[%c0_53, %c0_54, %c64, %c0_55], %112 {strides = array<i32>} : memref<1x2x128x128xbf16, #tpu.memory_space<vmem>>, vector<1x1x16x128xbf16>,
    %113 = vector.extract_strided_slice %108 {offsets = [16, 0], sizes = [16, 128], strides = [1, 1]} : vector<32x128xbf16> to vector<16x128xbf16>
    %c0_56 = arith.constant 0 : index
    %c1_57 = arith.constant 1 : index
    %c64_58 = arith.constant 64 : index
    %c0_59 = arith.constant 0 : index
    %114 = vector.load %arg6[%c0_56, %c1_57, %c64_58, %c0_59] : memref<1x2x128x128xbf16, #tpu.memory_space<vmem>>, vector<1x1x16x128xbf16>
    %115 = vector.shape_cast %114 : vector<1x1x16x128xbf16> to vector<16x128xbf16>
    %116 = vector.shape_cast %113 : vector<16x128xbf16> to vector<1x1x16x128xbf16>
    tpu.vector_store %arg6[%c0_56, %c1_57, %c64_58, %c0_59], %116 {strides = array<i32>} : memref<1x2x128x128xbf16, #tpu.memory_space<vmem>>, vector<1x1x16x128xbf16>,
    %c0_60 = arith.constant 0 : index
    %c40 = arith.constant 40 : index
    %c0_61 = arith.constant 0 : index
    %117 = vector.load %arg4[%c0_60, %c40, %c0_61] : memref<1x64x129xbf16, #tpu.memory_space<vmem>>, vector<1x16x129xbf16>
    %118 = vector.shape_cast %117 : vector<1x16x129xbf16> to vector<16x129xbf16>
    %119 = vector.extract_strided_slice %118 {offsets = [0, 0], sizes = [16, 128], strides = [1, 1]} : vector<16x129xbf16> to vector<16x128xbf16>
    %120 = vector.extract_strided_slice %118 {offsets = [0, 1], sizes = [16, 128], strides = [1, 1]} : vector<16x129xbf16> to vector<16x128xbf16>
    %121 = tpu.concatenate %119, %120 in 0 : vector<16x128xbf16>, vector<16x128xbf16> -> vector<32x128xbf16>
    %cst_62 = arith.constant dense<0.000000e+00> : vector<32x128xf32>
    %122 = tpu.matmul %0, %121, %cst_62 {dimension_numbers = #tpu.dot_dimension_numbers<[1], [0], [0], [1], [0, 0, 1, 1], [], []>} : vector<32x32xbf16>, vector<32x128xbf16>, vector<32x128xf32> -> vector<32x128xf32>
    %123 = vector.broadcast %1 : vector<32x1xf32> to vector<32x128xf32>
    %124 = arith.addf %122, %123 : vector<32x128xf32>
    %125 = arith.negf %124 : vector<32x128xf32>
    %126 = math.exp %125 : vector<32x128xf32>
    %cst_63 = arith.constant 1.000000e+00 : f32
    %127 = vector.broadcast %cst_63 : f32 to vector<32x128xf32>
    %128 = arith.addf %127, %126 : vector<32x128xf32>
    %129 = arith.divf %127, %128 : vector<32x128xf32>
    %130 = arith.mulf %124, %129 : vector<32x128xf32>
    %131 = arith.truncf %130 : vector<32x128xf32> to vector<32x128xbf16>
    %132 = vector.extract_strided_slice %131 {offsets = [0, 0], sizes = [16, 128], strides = [1, 1]} : vector<32x128xbf16> to vector<16x128xbf16>
    %c0_64 = arith.constant 0 : index
    %c0_65 = arith.constant 0 : index
    %c80 = arith.constant 80 : index
    %c0_66 = arith.constant 0 : index
    %133 = vector.load %arg6[%c0_64, %c0_65, %c80, %c0_66] : memref<1x2x128x128xbf16, #tpu.memory_space<vmem>>, vector<1x1x16x128xbf16>
    %134 = vector.shape_cast %133 : vector<1x1x16x128xbf16> to vector<16x128xbf16>
    %135 = vector.shape_cast %132 : vector<16x128xbf16> to vector<1x1x16x128xbf16>
    tpu.vector_store %arg6[%c0_64, %c0_65, %c80, %c0_66], %135 {strides = array<i32>} : memref<1x2x128x128xbf16, #tpu.memory_space<vmem>>, vector<1x1x16x128xbf16>,
    %136 = vector.extract_strided_slice %131 {offsets = [16, 0], sizes = [16, 128], strides = [1, 1]} : vector<32x128xbf16> to vector<16x128xbf16>
    %c0_67 = arith.constant 0 : index
    %c1_68 = arith.constant 1 : index
    %c80_69 = arith.constant 80 : index
    %c0_70 = arith.constant 0 : index
    %137 = vector.load %arg6[%c0_67, %c1_68, %c80_69, %c0_70] : memref<1x2x128x128xbf16, #tpu.memory_space<vmem>>, vector<1x1x16x128xbf16>
    %138 = vector.shape_cast %137 : vector<1x1x16x128xbf16> to vector<16x128xbf16>
    %139 = vector.shape_cast %136 : vector<16x128xbf16> to vector<1x1x16x128xbf16>
    tpu.vector_store %arg6[%c0_67, %c1_68, %c80_69, %c0_70], %139 {strides = array<i32>} : memref<1x2x128x128xbf16, #tpu.memory_space<vmem>>, vector<1x1x16x128xbf16>,
    %c0_71 = arith.constant 0 : index
    %c48_72 = arith.constant 48 : index
    %c0_73 = arith.constant 0 : index
    %140 = vector.load %arg4[%c0_71, %c48_72, %c0_73] : memref<1x64x129xbf16, #tpu.memory_space<vmem>>, vector<1x16x129xbf16>
    %141 = vector.shape_cast %140 : vector<1x16x129xbf16> to vector<16x129xbf16>
    %142 = vector.extract_strided_slice %141 {offsets = [0, 0], sizes = [16, 128], strides = [1, 1]} : vector<16x129xbf16> to vector<16x128xbf16>
    %143 = vector.extract_strided_slice %141 {offsets = [0, 1], sizes = [16, 128], strides = [1, 1]} : vector<16x129xbf16> to vector<16x128xbf16>
    %144 = tpu.concatenate %142, %143 in 0 : vector<16x128xbf16>, vector<16x128xbf16> -> vector<32x128xbf16>
    %cst_74 = arith.constant dense<0.000000e+00> : vector<32x128xf32>
    %145 = tpu.matmul %0, %144, %cst_74 {dimension_numbers = #tpu.dot_dimension_numbers<[1], [0], [0], [1], [0, 0, 1, 1], [], []>} : vector<32x32xbf16>, vector<32x128xbf16>, vector<32x128xf32> -> vector<32x128xf32>
    %146 = vector.broadcast %1 : vector<32x1xf32> to vector<32x128xf32>
    %147 = arith.addf %145, %146 : vector<32x128xf32>
    %148 = arith.negf %147 : vector<32x128xf32>
    %149 = math.exp %148 : vector<32x128xf32>
    %cst_75 = arith.constant 1.000000e+00 : f32
    %150 = vector.broadcast %cst_75 : f32 to vector<32x128xf32>
    %151 = arith.addf %150, %149 : vector<32x128xf32>
    %152 = arith.divf %150, %151 : vector<32x128xf32>
    %153 = arith.mulf %147, %152 : vector<32x128xf32>
    %154 = arith.truncf %153 : vector<32x128xf32> to vector<32x128xbf16>
    %155 = vector.extract_strided_slice %154 {offsets = [0, 0], sizes = [16, 128], strides = [1, 1]} : vector<32x128xbf16> to vector<16x128xbf16>
    %c0_76 = arith.constant 0 : index
    %c0_77 = arith.constant 0 : index
    %c96 = arith.constant 96 : index
    %c0_78 = arith.constant 0 : index
    %156 = vector.load %arg6[%c0_76, %c0_77, %c96, %c0_78] : memref<1x2x128x128xbf16, #tpu.memory_space<vmem>>, vector<1x1x16x128xbf16>
    %157 = vector.shape_cast %156 : vector<1x1x16x128xbf16> to vector<16x128xbf16>
    %158 = vector.shape_cast %155 : vector<16x128xbf16> to vector<1x1x16x128xbf16>
    tpu.vector_store %arg6[%c0_76, %c0_77, %c96, %c0_78], %158 {strides = array<i32>} : memref<1x2x128x128xbf16, #tpu.memory_space<vmem>>, vector<1x1x16x128xbf16>,
    %159 = vector.extract_strided_slice %154 {offsets = [16, 0], sizes = [16, 128], strides = [1, 1]} : vector<32x128xbf16> to vector<16x128xbf16>
    %c0_79 = arith.constant 0 : index
    %c1_80 = arith.constant 1 : index
    %c96_81 = arith.constant 96 : index
    %c0_82 = arith.constant 0 : index
    %160 = vector.load %arg6[%c0_79, %c1_80, %c96_81, %c0_82] : memref<1x2x128x128xbf16, #tpu.memory_space<vmem>>, vector<1x1x16x128xbf16>
    %161 = vector.shape_cast %160 : vector<1x1x16x128xbf16> to vector<16x128xbf16>
    %162 = vector.shape_cast %159 : vector<16x128xbf16> to vector<1x1x16x128xbf16>
    tpu.vector_store %arg6[%c0_79, %c1_80, %c96_81, %c0_82], %162 {strides = array<i32>} : memref<1x2x128x128xbf16, #tpu.memory_space<vmem>>, vector<1x1x16x128xbf16>,
    %c0_83 = arith.constant 0 : index
    %c56 = arith.constant 56 : index
    %c0_84 = arith.constant 0 : index
    %163 = vector.load %arg4[%c0_83, %c56, %c0_84] : memref<1x64x129xbf16, #tpu.memory_space<vmem>>, vector<1x8x129xbf16>
    %164 = vector.shape_cast %163 : vector<1x8x129xbf16> to vector<8x129xbf16>
    %c0_85 = arith.constant 0 : index
    %c0_86 = arith.constant 0 : index
    %c0_87 = arith.constant 0 : index
    %165 = vector.load %arg5[%c0_85, %c0_86, %c0_87] : memref<1x8x129xbf16, #tpu.memory_space<vmem>>, vector<1x8x129xbf16>
    %166 = vector.shape_cast %165 : vector<1x8x129xbf16> to vector<8x129xbf16>
    %167 = tpu.concatenate %164, %166 in 0 : vector<8x129xbf16>, vector<8x129xbf16> -> vector<16x129xbf16>
    %168 = vector.extract_strided_slice %167 {offsets = [0, 0], sizes = [16, 128], strides = [1, 1]} : vector<16x129xbf16> to vector<16x128xbf16>
    %169 = vector.extract_strided_slice %167 {offsets = [0, 1], sizes = [16, 128], strides = [1, 1]} : vector<16x129xbf16> to vector<16x128xbf16>
    %170 = tpu.concatenate %168, %169 in 0 : vector<16x128xbf16>, vector<16x128xbf16> -> vector<32x128xbf16>
    %cst_88 = arith.constant dense<0.000000e+00> : vector<32x128xf32>
    %171 = tpu.matmul %0, %170, %cst_88 {dimension_numbers = #tpu.dot_dimension_numbers<[1], [0], [0], [1], [0, 0, 1, 1], [], []>} : vector<32x32xbf16>, vector<32x128xbf16>, vector<32x128xf32> -> vector<32x128xf32>
    %172 = vector.broadcast %1 : vector<32x1xf32> to vector<32x128xf32>
    %173 = arith.addf %171, %172 : vector<32x128xf32>
    %174 = arith.negf %173 : vector<32x128xf32>
    %175 = math.exp %174 : vector<32x128xf32>
    %cst_89 = arith.constant 1.000000e+00 : f32
    %176 = vector.broadcast %cst_89 : f32 to vector<32x128xf32>
    %177 = arith.addf %176, %175 : vector<32x128xf32>
    %178 = arith.divf %176, %177 : vector<32x128xf32>
    %179 = arith.mulf %173, %178 : vector<32x128xf32>
    %180 = arith.truncf %179 : vector<32x128xf32> to vector<32x128xbf16>
    %181 = vector.extract_strided_slice %180 {offsets = [0, 0], sizes = [16, 128], strides = [1, 1]} : vector<32x128xbf16> to vector<16x128xbf16>
    %c0_90 = arith.constant 0 : index
    %c0_91 = arith.constant 0 : index
    %c112 = arith.constant 112 : index
    %c0_92 = arith.constant 0 : index
    %182 = vector.load %arg6[%c0_90, %c0_91, %c112, %c0_92] : memref<1x2x128x128xbf16, #tpu.memory_space<vmem>>, vector<1x1x16x128xbf16>
    %183 = vector.shape_cast %182 : vector<1x1x16x128xbf16> to vector<16x128xbf16>
    %184 = vector.shape_cast %181 : vector<16x128xbf16> to vector<1x1x16x128xbf16>
    tpu.vector_store %arg6[%c0_90, %c0_91, %c112, %c0_92], %184 {strides = array<i32>} : memref<1x2x128x128xbf16, #tpu.memory_space<vmem>>, vector<1x1x16x128xbf16>,
    %185 = vector.extract_strided_slice %180 {offsets = [16, 0], sizes = [16, 128], strides = [1, 1]} : vector<32x128xbf16> to vector<16x128xbf16>
    %c0_93 = arith.constant 0 : index
    %c1_94 = arith.constant 1 : index
    %c112_95 = arith.constant 112 : index
    %c0_96 = arith.constant 0 : index
    %186 = vector.load %arg6[%c0_93, %c1_94, %c112_95, %c0_96] : memref<1x2x128x128xbf16, #tpu.memory_space<vmem>>, vector<1x1x16x128xbf16>
    %187 = vector.shape_cast %186 : vector<1x1x16x128xbf16> to vector<16x128xbf16>
    %188 = vector.shape_cast %185 : vector<16x128xbf16> to vector<1x1x16x128xbf16>
    tpu.vector_store %arg6[%c0_93, %c1_94, %c112_95, %c0_96], %188 {strides = array<i32>} : memref<1x2x128x128xbf16, #tpu.memory_space<vmem>>, vector<1x1x16x128xbf16>,
    return
  }
  func.func @transform_0(%arg0: i32, %arg1: i32) -> (i32, i32) {
    %c0_i32 = arith.constant 0 : i32
    %c0_i32_0 = arith.constant 0 : i32
    %c0_i32_1 = arith.constant 0 : i32
    return %c0_i32, %c0_i32_0 : i32, i32
  }
  func.func @transform_1(%arg0: i32, %arg1: i32) -> (i32, i32) {
    %c0_i32 = arith.constant 0 : i32
    %c0_i32_0 = arith.constant 0 : i32
    %c0_i32_1 = arith.constant 0 : i32
    return %c0_i32, %c0_i32_0 : i32, i32
  }
  func.func @transform_2(%arg0: i32, %arg1: i32) -> (i32, i32, i32) {
    %c0_i32 = arith.constant 0 : i32
    %c0_i32_0 = arith.constant 0 : i32
    return %arg0, %arg1, %c0_i32 : i32, i32, i32
  }
  func.func @transform_3(%arg0: i32, %arg1: i32) -> (i32, i32, i32) {
    %c1_i32 = arith.constant 1 : i32
    %0 = arith.addi %arg1, %c1_i32 : i32
    %c8_i32 = arith.constant 8 : i32
    %1 = arith.muli %0, %c8_i32 : i32
    %c0_i32 = arith.constant 0 : i32
    %c0_i32_0 = arith.constant 0 : i32
    return %arg0, %1, %c0_i32 : i32, i32, i32
  }
  func.func @transform_4(%arg0: i32, %arg1: i32) -> (i32, i32, i32, i32) {
    %c0_i32 = arith.constant 0 : i32
    %c0_i32_0 = arith.constant 0 : i32
    %c0_i32_1 = arith.constant 0 : i32
    return %arg0, %c0_i32, %arg1, %c0_i32_0 : i32, i32, i32, i32
  }
}

</mosaic_0001>

<bundles_post_ra>
// kernel: tile.8
= control target key start
LH: loop header
LB: loop body
LE: loop exit
PB: predicated region body
PF: predicated region fallthrough
CT: control target
= control target key end

     0   :  { %s22_s0 = inlined_call_operand.vmem [shape: f32[8], index: 0, kind: input, shape index: {}]   ;;  %s23_s1 = inlined_call_operand.vmem [shape: f32[4,8], index: 1, kind: output, shape index: {}]  }
   0x1   :  { %v4_v0 = vld [vmem:[%s22_s0] ss:$0 sm:$0xff] }
   0x2   :  { %5 = vst [vmem:[%s23_s1] sm:$0xf] %v4_v0 }

// kernel: tile.0
= control target key start
LH: loop header
LB: loop body
LE: loop exit
PB: predicated region body
PF: predicated region fallthrough
CT: control target
= control target key end

     0   :  { %s67_s8 = smov 125   ;;  %vm8_vm0 = vcmask 7168   ;;  %s68_s11 = smov 126   ;;  %s118_s0 = inlined_call_operand.vmem [shape: f32[4,8], index: 0, kind: input, shape index: {}]   ;;  %s119_s1 = inlined_call_operand.vmem [shape: f32[32,1], index: 1, kind: output, shape index: {}]  }
   0x1   :  { %v5_v0 = vld [vmem:[%s118_s0] sm:$0xf]  ;;  %s66_s0 = smov 127   ;;  %s69_s12 = smov 124  }
   0x2   :  { %6 = vst [vmem:[#allocation0] sm:$0xf] %v5_v0  ;;  %s70_s13 = smov 123   ;;  %s71_s14 = smov 122  }
   0x3   :  { %s72_s15 = smov 121  }
   0x9   :  { %v10_v1 = vld [vmem:[#allocation0] sm:$0xf]  }
   0xa   :  { %v22_v2 = vld [vmem:[#allocation0] sm:$0xf]   ;;  %11 = vrot.lane.b32.xlu0 %v10_v1, %s66_s0 }
   0xb   :  { %23 = vrot.lane.b32.xlu1 %v22_v2, %s67_s8  ;;  %v16_v3 = vld [vmem:[#allocation0] sm:$0xf]  }
   0xc   :  { %v28_v4 = vld [vmem:[#allocation0] sm:$0xf]  }
   0xd   :  { %v7_v5 = vld [vmem:[#allocation0] sm:$0xf]  }
   0xe   :  { %9 = vst.msk [vmem:[%s119_s1] ss:$8 sm:$0xf] %vm8_vm0, %v7_v5   ;;  %17 = vrot.lane.b32.xlu0 %v16_v3, %s68_s11  ;;  %v34_v6 = vld [vmem:[#allocation0] sm:$0xf]  }
   0xf   :  { %29 = vrot.lane.b32.xlu1 %v28_v4, %s69_s12  ;;  %v40_v7 = vld [vmem:[#allocation0] sm:$0xf]  }
  0x10   :  { %v46_v8 = vld [vmem:[#allocation0] sm:$0xf]  }
  0x12   :  { %35 = vrot.lane.b32.xlu0 %v34_v6, %s70_s13 }
  0x13   :  { %41 = vrot.lane.b32.xlu1 %v40_v7, %s71_s14 }
  0x16   :  { %47 = vrot.lane.b32.xlu0 %v46_v8, %s72_s15 }
  0x7c   :  { %v12_v9 = vpop.permute.xlu0 %11  }
  0x7d   :  { %v24_v10 = vpop.permute.xlu1 %23   ;;  %52 = vst.msk [vmem:[%s119_s1 + $0x1] ss:$8 sm:$0xf] %vm8_vm0, %v12_v9  }
  0x7e   :  { %54 = vst.msk [vmem:[%s119_s1 + $0x3] ss:$8 sm:$0xf] %vm8_vm0, %v24_v10  }
  0x80   :  { %v18_v11 = vpop.permute.xlu0 %17  }
  0x81   :  { %v30_v12 = vpop.permute.xlu1 %29   ;;  %53 = vst.msk [vmem:[%s119_s1 + $0x2] ss:$8 sm:$0xf] %vm8_vm0, %v18_v11  }
  0x82   :  { %55 = vst.msk [vmem:[%s119_s1 + $0x4] ss:$8 sm:$0xf] %vm8_vm0, %v30_v12  }
  0x84   :  { %v36_v13 = vpop.permute.xlu0 %35  }
  0x85   :  { %v42_v14 = vpop.permute.xlu1 %41   ;;  %56 = vst.msk [vmem:[%s119_s1 + $0x5] ss:$8 sm:$0xf] %vm8_vm0, %v36_v13  }
  0x86   :  { %57 = vst.msk [vmem:[%s119_s1 + $0x6] ss:$8 sm:$0xf] %vm8_vm0, %v42_v14  }
  0x88   :  { %v48_v15 = vpop.permute.xlu0 %47  }
  0x89   :  { %58 = vst.msk [vmem:[%s119_s1 + $0x7] ss:$8 sm:$0xf] %vm8_vm0, %v48_v15  }

// kernel: conv_transpose_silu.1
= control target key start
LH: loop header
LB: loop body
LE: loop exit
PB: predicated region body
PF: predicated region fallthrough
CT: control target
= control target key end

     0   :  { %s2175_s15 = smov 0   ;;  %s2177_s16 = smov 0   ;;  %s2602_s0 = inlined_call_operand.vmem [shape: bf16[32,32], index: 0, kind: input, shape index: {}]   ;;  %s2603_s1 = inlined_call_operand.vmem [shape: f32[32,1], index: 1, kind: input, shape index: {}]   ;;  %s2604_s2 = inlined_call_operand.vmem [shape: bf16[2,256,129], index: 2, kind: input, shape index: {}, may-alias: {2,3}]   ;;  %s2605_s3 = inlined_call_operand.vmem [shape: bf16[2,256,129], index: 3, kind: input, shape index: {}, may-alias: {2,3}]   ;;  %s2606_s4 = inlined_call_operand.vmem [shape: bf16[2,2,384,128], index: 4, kind: output, shape index: {}]  }
   0x1   :  { %s2179_s17 = smov 0   ;;  %s2181_s18 = smov 0  }
   0x2   :  { %s2183_s19 = smov 0   ;;  %s2185_s20 = smov 0  }
   0x3   :  { %s2187_s21 = smov 0  }
   0x4 LB: > { %s23_s22 = sadd.s32 1, %s2138_s19  ;;  %s26_s23 = sadd.s32 1, %s2142_s20  ;;  %s2146_s21 = sphi %s2187_s21, %s14_s21   ;;  %s2142_s20 = sphi %s2185_s20, %s2613_s20   ;;  %s2138_s19 = sphi %s2183_s19, %s2612_s19   ;;  %s2134_s18 = sphi %s2181_s18, %s2611_s18   ;;  %s2130_s17 = sphi %s2179_s17, %s2610_s17   ;;  %s2126_s16 = sphi %s2177_s16, %s2609_s16   ;;  %s2122_s15 = sphi %s2175_s15, %s2608_s15  }
   0x5   : > { %p24_p0 = scmp.ge.s32.totalorder %s23_s22, 3  ;;  %s1517_s24 = sadd.s32 4294967295, %s2146_s21  }
   0x6   : > { %p147_p1 = scmp.ne.s32.totalorder %s2126_s16, %s2122_s15  ;;  %p148_p2 = scmp.eq.s32.totalorder %s1517_s24, 5 }
   0x7   : > { %s2615_s22 = smov (%p24_p0, %s23_s22), 0  ;;  %s2617_s23 = smov (!%p24_p0, %s26_s23), %s2142_s20 }
   0x8   : > { %s133_s25 = ssub.s32 %s2138_s19, %s2615_s22  ;;  %p28_p3 = scmp.ge.s32.totalorder %s2617_s23, 2 }
   0x9   : > { %p1523_p4 = scmp.ge.s32.totalorder %s2146_s21, 1  ;;  %p2221_p5 = por %p148_p2, %p147_p1 }
   0xa   : > { %p208_p6 = scmp.lt.s32.totalorder %s2146_s21, 7  ;;  %s2619_s23 = smov (%p28_p3, %s2617_s23), 0 }
   0xb   : > { %s132_s27 = ssub.s32 %s2142_s20, %s2619_s23  ;;  %s137_s29 = sadd.s32 1, %s2126_s16 }
   0xc   : > { %p209_p7 = pnand %p1523_p4, %p208_p6  ;;  %s134_s28 = sor.u32 %s133_s25, %s132_s27 }
   0xd   : > { %p135_p8 = scmp.eq.s32.totalorder %s134_s28, 0  ;;  %s1525_s5 = sshll.u32 (!%p209_p7), %s2130_s17, 3 }
   0xe   : > { %212 = sbr.rel (%p209_p7) target bundleno = 444 (0x1bc), region = 36  ;;  %p250_p9 = scmp.lt.s32.totalorder (!%p209_p7), %s2134_s18, 1 }
   0xf   : > { %s2232_s30 = scalar_select %p135_p8, %s2126_s16, %s137_s29  }
  0x10   : > { %p252_p10 = scmp.lt.s32.totalorder (!%p209_p7), %s1525_s5, 31  ;;  %s1659_s12 = sadd.s32 (!%p209_p7), 8, %s1525_s5 }
  0x11   : > { %p264_p11 = scmp.lt.s32.totalorder (!%p209_p7), %s1659_s12, 31  ;;  %s2148_s28 = smov (!%p209_p7), 127  }
  0x13   : > { %s2237_s6 = scalar_select %p250_p9, %s2134_s18, 1  ;;  %v2257_v5 = vld [vmem:[%s2602_s0] sm:$0xff]   ;;  %vm331_vm0 = vcmask 261120   ;;  %vm1132_vm1 = vcmask 1043456   ;;  %v2149_v30 = vmov 0   ;;  %v280_v31 = vld [vmem:[%s2603_s1 + $0x8] sm:$0xff] }
  0x14   : > { %s253_s7 = scalar_select %p252_p10, %s1525_s5, 31  ;;  %1823 = vmatprep.mubr.msk.bf16.mxu0 %vm331_vm0, %v2257_v5  ;;  %1831 = vmatprep.mubr.msk.bf16.mxu1 %vm331_vm0, %v2257_v5  ;;  %v279_v32 = vld [vmem:[%s2603_s1] sm:$0xff]  ;;  %v281_v33 = vld [vmem:[%s2603_s1 + $0x10] sm:$0xff]  ;;  %v282_v34 = vld [vmem:[%s2603_s1 + $0x18] sm:$0xff]  ;;  %vm298_vm2 = vcmask 1039360  }
  0x15   : > { %s1527_s8 = sshll.u32 %s2237_s6, 6  ;;  %s2621_s12 = smov (!%p264_p11, %s1659_s12), 31  ;;  %1943 = vset.pattern.permute.xlu1 %v2149_v30  ;;  %1942 = vset.pattern.permute.xlu0 %v2149_v30  ;;  %v1963_v43 = vld [vmem:[%s2602_s0 + $0x8] sm:$0xff]  }
  0x16   : > { %s1526_s9 = sshll.u32 %s253_s7, 1  ;;  %s1530_s29 = sshll.u32 %s2621_s12, 1 }
  0x17   : > { %s256_s10 = sadd.s32 %s1527_s8, %s1526_s9  ;;  %s268_s5 = sadd.s32 %s1530_s29, %s1527_s8 }
  0x18   : > { %s1528_s11 = sshll.u32 %s256_s10, 2  ;;  %s1532_s7 = sshll.u32 %s268_s5, 2 }
  0x19   : > { %s2245_s24 = scalar_lea.vmem %s2604_s2, %s1528_s11  ;;  %s270_s11 = scalar_lea.vmem %s2605_s3, %s1532_s7 }
  0x1a   : > { %v436_v0 = vld [vmem:[%s2245_s24 + $0x8] sm:$0xff]  ;;  %v437_v1 = vld [vmem:[%s2245_s24 + $0x10] sm:$0xff]  ;;  %v283_v2 = vld [vmem:[%s2245_s24] sm:$0xff]  ;;  %s246_s5 = sand.u32 1, %s2122_s15   ;;  %s1650_s9 = sshll.u32 (%p2221_p5), %s2130_s17, 4 }
  0x1b   : > { %v2250_v3 = vcombine.low %v436_v0, %v437_v1  ;;  %v2252_v4 = vcombine.low %v283_v2, %v436_v0  ;;  %v1550_v6 = vcombine.high %v436_v0, %v437_v1  ;;  %v1534_v7 = vcombine.high %v283_v2, %v436_v0  ;;  %v551_v8 = vld [vmem:[%s2245_s24 + $0x18] sm:$0xff]  ;;  %v665_v11 = vld [vmem:[%s2245_s24 + $0x20] sm:$0xff]  ;;  %v779_v14 = vld [vmem:[%s2245_s24 + $0x28] sm:$0xff]  ;;  %s2473_s15 = sshll.u32 %s246_s5, 7  ;;  %s1883_s10 = smul.u32 (%p2221_p5), 96, %s2134_s18 }
  0x1c   : > { %v1564_v9 = vcombine.high %v437_v1, %v551_v8  ;;  %v2270_v10 = vcombine.low %v437_v1, %v551_v8  ;;  %v1578_v12 = vcombine.high %v551_v8, %v665_v11  ;;  %v2276_v13 = vcombine.low %v551_v8, %v665_v11  ;;  %v893_v17 = vld [vmem:[%s2245_s24 + $0x30] sm:$0xff]  ;;  %v1007_v20 = vld [vmem:[%s2245_s24 + $0x38] sm:$0xff]  ;;  %v1121_v21 = vld [vmem:[%s270_s11] sm:$0xff]  ;;  %s2504_s7 = scalar_lea.vmem [#allocation2], %s2473_s15 }
  0x1d   : > { %447 = vrot.lane.b32.xlu1 %v2250_v3, %s2148_s28  ;;  %294 = vrot.lane.b32.xlu0 %v2252_v4, %s2148_s28  ;;  %v1592_v15 = vcombine.high %v665_v11, %v779_v14  ;;  %v2284_v16 = vcombine.low %v665_v11, %v779_v14  ;;  %v1606_v18 = vcombine.high %v779_v14, %v893_v17  ;;  %s1254_s26 = sadd.s32 (%p2221_p5), %s1883_s10, %s1650_s9 }
  0x1e   : > { %v2293_v19 = vcombine.low %v779_v14, %v893_v17  ;;  %v1620_v22 = vcombine.high %v893_v17, %v1007_v20  ;;  %v2299_v23 = vcombine.low %v893_v17, %v1007_v20  ;;  %v1634_v24 = vcombine.high %v1007_v20, %v1007_v20  ;;  %s1651_s11 = sshll.u32 (%p2221_p5), %s1254_s26, 2 }
  0x1f   : > { %v1636_v25 = vcombine.high %v1121_v21, %v1121_v21  ;;  %v1633_v26 = vcombine.low %v1007_v20, %v1007_v20  ;;  %v1635_v27 = vcombine.low %v1121_v21, %v1121_v21  ;;  %s1256_s18 = scalar_lea.vmem (%p2221_p5), %s2606_s4, %s1651_s11 }
  0x21   : > { %449 = vrot.lane.b32.xlu1 %v1550_v6, %s2148_s28  ;;  %296 = vrot.lane.b32.xlu0 %v1534_v7, %s2148_s28  ;;  %v1139_v28 = vsel %vm1132_vm1, %v1634_v24, %v1636_v25  ;;  %v2304_v29 = vsel %vm1132_vm1, %v1633_v26, %v1635_v27 }
  0x25   : > { %563 = vrot.lane.b32.xlu1 %v1564_v9, %s2148_s28  ;;  %561 = vrot.lane.b32.xlu0 %v2270_v10, %s2148_s28 }
  0x29   : > { %677 = vrot.lane.b32.xlu1 %v1578_v12, %s2148_s28  ;;  %675 = vrot.lane.b32.xlu0 %v2276_v13, %s2148_s28 }
  0x2d   : > { %791 = vrot.lane.b32.xlu1 %v1592_v15, %s2148_s28  ;;  %789 = vrot.lane.b32.xlu0 %v2284_v16, %s2148_s28 }
  0x31   : > { %905 = vrot.lane.b32.xlu1 %v1606_v18, %s2148_s28  ;;  %903 = vrot.lane.b32.xlu0 %v2293_v19, %s2148_s28 }
  0x35   : > { %1019 = vrot.lane.b32.xlu1 %v1620_v22, %s2148_s28  ;;  %1017 = vrot.lane.b32.xlu0 %v2299_v23, %s2148_s28 }
  0x39   : > { %1144 = vrot.lane.b32.xlu1 %v1139_v28, %s2148_s28  ;;  %1142 = vrot.lane.b32.xlu0 %v2304_v29, %s2148_s28 }
  0x3d   : > { %308 = vperm.xlu1 %1943, %v280_v31   ;;  %303 = vperm.xlu0 %1942, %v279_v32  }
  0x41   : > { %313 = vperm.xlu1 %1943, %v281_v33   ;;  %318 = vperm.xlu0 %1942, %v282_v34  }
  0x8f   : > { %v448_v35 = vpop.permute.xlu1 %447  ;;  %v295_v36 = vpop.permute.xlu0 %294 }
  0x93   : > { %v450_v37 = vpop.permute.xlu1 %449  ;;  %v297_v38 = vpop.permute.xlu0 %296 }
  0x94   : > { %v299_v39 = vsel %vm298_vm2, %v295_v36, %v297_v38  ;;  %v451_v40 = vsel %vm298_vm2, %v448_v35, %v450_v37 }
  0x95   : > { %1819 = vmatprep.subr.bf16.mxu0 %v299_v39  ;;  %1827 = vmatprep.subr.bf16.mxu1 %v451_v40 }
  0x96   : > { %1820 = vmatpush3.bf16.msra.mxu0 %v299_v39  ;;  %1828 = vmatpush3.bf16.msra.mxu1 %v451_v40 }
  0x97   : > { %v564_v41 = vpop.permute.xlu1 %563  ;;  %v562_v42 = vpop.permute.xlu0 %561  ;;  %1821 = vmatprep.subr.bf16.mxu0 %v2252_v4  ;;  %1829 = vmatprep.subr.bf16.mxu1 %v2250_v3 }
  0x98   : > { %v565_v44 = vsel %vm298_vm2, %v562_v42, %v564_v41 }
  0x9a   : > { %1822 = vmatpush3.bf16.msra.mxu0 %v2252_v4  ;;  %1830 = vmatpush3.bf16.msra.mxu1 %v2250_v3 }
  0x9b   : > { %v678_v45 = vpop.permute.xlu1 %677  ;;  %1835 = vmatprep.subr.bf16.mxu0 %v565_v44  ;;  %v676_v46 = vpop.permute.xlu0 %675 }
  0x9c   : > { %v679_v47 = vsel %vm298_vm2, %v676_v46, %v678_v45 }
  0x9d   : > { %1824 = vmatmul.mubr.msk.bf16.vlgmr.msra.gmra.mxu0 %vm331_vm0, %v1963_v43  ;;  %1832 = vmatmul.mubr.msk.bf16.vlgmr.msra.gmra.mxu1 %vm331_vm0, %v1963_v43 }
  0x9e   : > { %1843 = vmatprep.subr.bf16.mxu1 %v679_v47  ;;  %1836 = vmatpush3.bf16.msra.mxu0 %v565_v44 }
  0x9f   : > { %1844 = vmatpush3.bf16.msra.mxu1 %v679_v47  ;;  %v792_v48 = vpop.permute.xlu1 %791  ;;  %v790_v49 = vpop.permute.xlu0 %789  ;;  %1837 = vmatprep.subr.bf16.mxu0 %v2270_v10 }
  0xa0   : > { %1845 = vmatprep.subr.bf16.mxu1 %v2276_v13  ;;  %1839 = vmatprep.mubr.msk.bf16.mxu0 %vm331_vm0, %v2257_v5  ;;  %v793_v50 = vsel %vm298_vm2, %v790_v49, %v792_v48 }
  0xa1   : > { %1847 = vmatprep.mubr.msk.bf16.mxu1 %vm331_vm0, %v2257_v5 }
  0xa2   : > { %1838 = vmatpush3.bf16.msra.mxu0 %v2270_v10 }
  0xa3   : > { %1846 = vmatpush3.bf16.msra.mxu1 %v2276_v13  ;;  %v906_v51 = vpop.permute.xlu1 %905  ;;  %1851 = vmatprep.subr.bf16.mxu0 %v793_v50  ;;  %v904_v52 = vpop.permute.xlu0 %903 }
  0xa4   : > { %v907_v53 = vsel %vm298_vm2, %v904_v52, %v906_v51 }
  0xa5   : > { %1840 = vmatmul.mubr.msk.bf16.vlgmr.msra.gmra.mxu0 %vm331_vm0, %v1963_v43  ;;  %1859 = vmatprep.subr.bf16.mxu1 %v907_v53 }
  0xa6   : > { %1848 = vmatmul.mubr.msk.bf16.vlgmr.msra.gmra.mxu1 %vm331_vm0, %v1963_v43  ;;  %1852 = vmatpush3.bf16.msra.mxu0 %v793_v50 }
  0xa7   : > { %1860 = vmatpush3.bf16.msra.mxu1 %v907_v53  ;;  %v1020_v54 = vpop.permute.xlu1 %1019  ;;  %v1018_v55 = vpop.permute.xlu0 %1017  ;;  %1853 = vmatprep.subr.bf16.mxu0 %v2284_v16 }
  0xa8   : > { %1861 = vmatprep.subr.bf16.mxu1 %v2293_v19  ;;  %1855 = vmatprep.mubr.msk.bf16.mxu0 %vm331_vm0, %v2257_v5  ;;  %v1021_v56 = vsel %vm298_vm2, %v1018_v55, %v1020_v54 }
  0xa9   : > { %1863 = vmatprep.mubr.msk.bf16.mxu1 %vm331_vm0, %v2257_v5 }
  0xaa   : > { %1854 = vmatpush3.bf16.msra.mxu0 %v2284_v16 }
  0xab   : > { %1862 = vmatpush3.bf16.msra.mxu1 %v2293_v19  ;;  %v1145_v57 = vpop.permute.xlu1 %1144  ;;  %1867 = vmatprep.subr.bf16.mxu0 %v1021_v56  ;;  %v1143_v58 = vpop.permute.xlu0 %1142 }
  0xac   : > { %v1146_v59 = vsel %vm298_vm2, %v1143_v58, %v1145_v57 }
  0xad   : > { %1856 = vmatmul.mubr.msk.bf16.vlgmr.msra.gmra.mxu0 %vm331_vm0, %v1963_v43  ;;  %1875 = vmatprep.subr.bf16.mxu1 %v1146_v59 }
  0xae   : > { %1864 = vmatmul.mubr.msk.bf16.vlgmr.msra.gmra.mxu1 %vm331_vm0, %v1963_v43  ;;  %1868 = vmatpush3.bf16.msra.mxu0 %v1021_v56 }
  0xaf   : > { %1876 = vmatpush3.bf16.msra.mxu1 %v1146_v59  ;;  %1869 = vmatprep.subr.bf16.mxu0 %v2299_v23 }
  0xb0   : > { %1877 = vmatprep.subr.bf16.mxu1 %v2304_v29  ;;  %1871 = vmatprep.mubr.msk.bf16.mxu0 %vm331_vm0, %v2257_v5 }
  0xb1   : > { %1879 = vmatprep.mubr.msk.bf16.mxu1 %vm331_vm0, %v2257_v5 }
  0xb2   : > { %1870 = vmatpush3.bf16.msra.mxu0 %v2299_v23 }
  0xb3   : > { %1878 = vmatpush3.bf16.msra.mxu1 %v2304_v29 }
  0xb5   : > { %1872 = vmatmul.mubr.msk.bf16.vlgmr.msra.gmra.mxu0 %vm331_vm0, %v1963_v43 }
  0xb6   : > { %1880 = vmatmul.mubr.msk.bf16.vlgmr.msra.gmra.mxu1 %vm331_vm0, %v1963_v43 }
  0xb8   : > { %v2368_v60 = vpop.permute.xlu1 %308  ;;  %v2370_v61 = vpop.permute.xlu0 %303 }
  0xbc   : > { %v2372_v62 = vpop.permute.xlu1 %313  ;;  %v2380_v3 = vpop.permute.xlu0 %318 }
 0x15d   : > { %v1833_v63 = vpop.f32.mrf.mxu1  ;;  %v1825_v0 = vpop.f32.mrf.mxu0 }
 0x15e   : > { %v2375_v1 = vadd.f32 %v1833_v63, %v2372_v62  ;;  %v2378_v2 = vadd.f32 %v1825_v0, %v2372_v62 }
 0x15f   : > { %v372_v4 = vpop.f32.mrf.mxu0  ;;  %v487_v5 = vpop.f32.mrf.mxu1 }
 0x160   : > { %v1555_v6 = vmul.f32 -1.442695, %v2375_v1  ;;  %v1541_v7 = vmul.f32 -1.442695, %v2378_v2  ;;  %v2385_v8 = vadd.f32 %v372_v4, %v2370_v61  ;;  %v2388_v9 = vadd.f32 %v487_v5, %v2370_v61 }
 0x161   : > { %v1826_v10 = vpop.f32.mrf.mxu0  ;;  %v1834_v11 = vpop.f32.mrf.mxu1 }
 0x162   : > { %1964 = vpow2.f32 %v1555_v6  ;;  %v1539_v12 = vmul.f32 -1.442695, %v2385_v8  ;;  %v1553_v13 = vmul.f32 -1.442695, %v2388_v9  ;;  %v2393_v14 = vadd.f32 %v1826_v10, %v2380_v3 }
 0x163   : > { %1966 = vpow2.f32 %v1541_v7  ;;  %v2396_v15 = vadd.f32 %v1834_v11, %v2380_v3  ;;  %v375_v16 = vpop.f32.mrf.mxu0  ;;  %v490_v17 = vpop.f32.mrf.mxu1 }
 0x164   : > { %1968 = vpow2.f32 %v1539_v12  ;;  %v1542_v18 = vmul.f32 -1.442695, %v2393_v14  ;;  %v2400_v19 = vadd.f32 %v375_v16, %v2368_v60  ;;  %v2403_v20 = vadd.f32 %v490_v17, %v2368_v60 }
 0x165   : > { %1970 = vpow2.f32 %v1553_v13  ;;  %v1556_v21 = vmul.f32 -1.442695, %v2396_v15  ;;  %v1841_v22 = vpop.f32.mrf.mxu0 }
 0x166   : > { %1972 = vpow2.f32 %v1542_v18  ;;  %v1540_v23 = vmul.f32 -1.442695, %v2400_v19  ;;  %v1554_v24 = vmul.f32 -1.442695, %v2403_v20  ;;  %v2409_v25 = vadd.f32 %v1841_v22, %v2372_v62  ;;  %v1849_v26 = vpop.f32.mrf.mxu1 }
 0x167   : > { %1974 = vpow2.f32 %v1556_v21  ;;  %v2412_v27 = vadd.f32 %v1849_v26, %v2372_v62  ;;  %v601_v28 = vpop.f32.mrf.mxu0 }
 0x168   : > { %1976 = vpow2.f32 %v1540_v23  ;;  %v1569_v29 = vmul.f32 -1.442695, %v2409_v25  ;;  %v2416_v30 = vadd.f32 %v601_v28, %v2370_v61  ;;  %v715_v31 = vpop.f32.mrf.mxu1 }
 0x169   : > { %1978 = vpow2.f32 %v1554_v24  ;;  %v1583_v32 = vmul.f32 -1.442695, %v2412_v27  ;;  %v2420_v33 = vadd.f32 %v715_v31, %v2370_v61  ;;  %v1842_v34 = vpop.f32.mrf.mxu0 }
 0x16a   : > { %1980 = vpow2.f32 %v1569_v29  ;;  %v1567_v35 = vmul.f32 -1.442695, %v2416_v30  ;;  %v2424_v36 = vadd.f32 %v1842_v34, %v2380_v3  ;;  %v1850_v37 = vpop.f32.mrf.mxu1 }
 0x16b   : > { %1982 = vpow2.f32 %v1583_v32  ;;  %v1581_v38 = vmul.f32 -1.442695, %v2420_v33  ;;  %v2428_v39 = vadd.f32 %v1850_v37, %v2380_v3  ;;  %v604_v40 = vpop.f32.mrf.mxu0 }
 0x16c   : > { %1984 = vpow2.f32 %v1567_v35  ;;  %v1570_v41 = vmul.f32 -1.442695, %v2424_v36  ;;  %v2432_v42 = vadd.f32 %v604_v40, %v2368_v60  ;;  %v718_v43 = vpop.f32.mrf.mxu1 }
 0x16d   : > { %1986 = vpow2.f32 %v1581_v38  ;;  %v1584_v44 = vmul.f32 -1.442695, %v2428_v39  ;;  %v2436_v45 = vadd.f32 %v718_v43, %v2368_v60  ;;  %v1857_v46 = vpop.f32.mrf.mxu0 }
 0x16e   : > { %1988 = vpow2.f32 %v1570_v41  ;;  %v1568_v47 = vmul.f32 -1.442695, %v2432_v42  ;;  %v1865_v48 = vpop.f32.mrf.mxu1  ;;  %v2441_v21 = vadd.f32 %v1857_v46, %v2372_v62 }
 0x16f   : > { %v1965_v49 = vpop.eup %1964  ;;  %1990 = vpow2.f32 %v1584_v44  ;;  %v1582_v50 = vmul.f32 -1.442695, %v2436_v45  ;;  %v829_v51 = vpop.f32.mrf.mxu0  ;;  %v2444_v32 = vadd.f32 %v1865_v48, %v2372_v62 }
 0x170   : > { %v1967_v52 = vpop.eup %1966  ;;  %v516_v53 = vadd.f32 1.0, %v1965_v49  ;;  %1992 = vpow2.f32 %v1568_v47  ;;  %v943_v54 = vpop.f32.mrf.mxu1  ;;  %v1597_v38 = vmul.f32 -1.442695, %v2441_v21  ;;  %v2448_v40 = vadd.f32 %v829_v51, %v2370_v61 }
 0x171   : > { %v1969_v55 = vpop.eup %1968  ;;  %v401_v56 = vadd.f32 1.0, %v1967_v52  ;;  %1994 = vpow2.f32 %v1582_v50  ;;  %v1858_v57 = vpop.f32.mrf.mxu0  ;;  %v2451_v44 = vadd.f32 %v943_v54, %v2370_v61 }
 0x172   : > { %v1971_v58 = vpop.eup %1970  ;;  %1996 = vrcp.f32 %v516_v53  ;;  %v399_v59 = vadd.f32 1.0, %v1969_v55  ;;  %v1866_v63 = vpop.f32.mrf.mxu1  ;;  %v2454_v46 = vadd.f32 %v1858_v57, %v2380_v3 }
 0x173   : > { %v1973_v0 = vpop.eup %1972  ;;  %1998 = vrcp.f32 %v401_v56  ;;  %v514_v4 = vadd.f32 1.0, %v1971_v58  ;;  %v832_v11 = vpop.f32.mrf.mxu0  ;;  %v2458_v49 = vadd.f32 %v1866_v63, %v2380_v3 }
 0x174   : > { %v1975_v5 = vpop.eup %1974  ;;  %2000 = vrcp.f32 %v399_v59  ;;  %v402_v6 = vadd.f32 1.0, %v1973_v0  ;;  %v946_v16 = vpop.f32.mrf.mxu1  ;;  %v2461_v50 = vadd.f32 %v832_v11, %v2368_v60  ;;  %v1611_v59 = vmul.f32 -1.442695, %v2444_v32 }
 0x175   : > { %v1977_v7 = vpop.eup %1976  ;;  %2002 = vrcp.f32 %v514_v4  ;;  %v517_v10 = vadd.f32 1.0, %v1975_v5  ;;  %v1873_v28 = vpop.f32.mrf.mxu0  ;;  %v2464_v54 = vadd.f32 %v946_v16, %v2368_v60  ;;  %v1595_v4 = vmul.f32 -1.442695, %v2448_v40 }
 0x176   : > { %v1979_v12 = vpop.eup %1978  ;;  %2004 = vrcp.f32 %v402_v6  ;;  %v400_v13 = vadd.f32 1.0, %v1977_v7  ;;  %v1881_v34 = vpop.f32.mrf.mxu1  ;;  %v2467_v55 = vadd.f32 %v1873_v28, %v2372_v62  ;;  %v1609_v6 = vmul.f32 -1.442695, %v2451_v44 }
 0x177   : > { %v1981_v17 = vpop.eup %1980  ;;  %2006 = vrcp.f32 %v517_v10  ;;  %v515_v18 = vadd.f32 1.0, %v1979_v12  ;;  %v1057_v51 = vpop.f32.mrf.mxu0  ;;  %v2471_v63 = vadd.f32 %v1881_v34, %v2372_v62  ;;  %v1598_v7 = vmul.f32 -1.442695, %v2454_v46 }
 0x178   : > { %v1983_v22 = vpop.eup %1982  ;;  %2008 = vrcp.f32 %v400_v13  ;;  %v630_v23 = vadd.f32 1.0, %v1981_v17  ;;  %v1182_v56 = vpop.f32.mrf.mxu1  ;;  %v1612_v10 = vmul.f32 -1.442695, %v2458_v49  ;;  %v1596_v62 = vmul.f32 -1.442695, %v2461_v50 }
 0x179   : > { %v1985_v24 = vpop.eup %1984  ;;  %2010 = vrcp.f32 %v515_v18  ;;  %v744_v26 = vadd.f32 1.0, %v1983_v22  ;;  %v1874_v11 = vpop.f32.mrf.mxu0  ;;  %v1610_v13 = vmul.f32 -1.442695, %v2464_v54  ;;  %v1625_v16 = vmul.f32 -1.442695, %v2467_v55 }
 0x17a   : > { %v1987_v29 = vpop.eup %1986  ;;  %2012 = vrcp.f32 %v630_v23  ;;  %v628_v31 = vadd.f32 1.0, %v1985_v24  ;;  %v1882_v17 = vpop.f32.mrf.mxu1  ;;  %v1641_v22 = vmul.f32 -1.442695, %v2471_v63  ;;  %v2484_v23 = vadd.f32 %v1057_v51, %v2370_v61 }
 0x17b   : > { %v1989_v35 = vpop.eup %1988  ;;  %2014 = vrcp.f32 %v744_v26  ;;  %v742_v37 = vadd.f32 1.0, %v1987_v29  ;;  %v2487_v24 = vadd.f32 %v1182_v56, %v2370_v61  ;;  %v1060_v61 = vpop.f32.mrf.mxu0 }
 0x17c   : > { %v1991_v41 = vpop.eup %1990  ;;  %2016 = vrcp.f32 %v628_v31  ;;  %v631_v43 = vadd.f32 1.0, %v1989_v35  ;;  %v2492_v31 = vadd.f32 %v1874_v11, %v2380_v3 }
 0x17d   : > { %v1993_v47 = vpop.eup %1992  ;;  %2018 = vrcp.f32 %v742_v37  ;;  %v745_v48 = vadd.f32 1.0, %v1991_v41 }
 0x17e   : > { %v1995_v52 = vpop.eup %1994  ;;  %2020 = vrcp.f32 %v631_v43  ;;  %v629_v53 = vadd.f32 1.0, %v1993_v47  ;;  %v1185_v47 = vpop.f32.mrf.mxu1 }
 0x17f   : > { %v1997_v57 = vpop.eup %1996  ;;  %2022 = vrcp.f32 %v745_v48  ;;  %v743_v58 = vadd.f32 1.0, %v1995_v52  ;;  %v2514_v56 = vadd.f32 %v1185_v47, %v2368_v60 }
 0x180   : > { %v1999_v0 = vpop.eup %1998  ;;  %2024 = vrcp.f32 %v629_v53  ;;  %v528_v35 = vmul.f32 %v1997_v57, %v2375_v1 }
 0x181   : > { %v2001_v5 = vpop.eup %2000  ;;  %2026 = vrcp.f32 %v743_v58  ;;  %v413_v28 = vmul.f32 %v1999_v0, %v2378_v2  ;;  %v1626_v58 = vmul.f32 -1.442695, %v2492_v31 }
 0x182   : > { %v2003_v12 = vpop.eup %2002  ;;  %2028 = vpow2.f32 %v1597_v38  ;;  %v2497_v38 = vadd.f32 %v1882_v17, %v2380_v3  ;;  %v411_v2 = vmul.f32 %v2001_v5, %v2385_v8  ;;  %v1623_v8 = vmul.f32 -1.442695, %v2484_v23 }
 0x183   : > { %v2005_v18 = vpop.eup %2004  ;;  %2030 = vpow2.f32 %v1611_v59  ;;  %v526_v51 = vmul.f32 %v2003_v12, %v2388_v9  ;;  %v1640_v12 = vmul.f32 -1.442695, %v2514_v56 }
 0x184   : > { %v2007_v26 = vpop.eup %2006  ;;  %v414_v29 = vmul.f32 %v2005_v18, %v2393_v14  ;;  %2032 = vpow2.f32 %v1595_v4  ;;  %v1642_v0 = vmul.f32 -1.442695, %v2497_v38 }
 0x185   : > { %v2009_v34 = vpop.eup %2008  ;;  %v529_v37 = vmul.f32 %v2007_v26, %v2396_v15  ;;  %2034 = vpow2.f32 %v1609_v6 }
 0x186   : > { %v2011_v41 = vpop.eup %2010  ;;  %v1700_v43 = vpack.c.bf16 %v414_v29, %v413_v28  ;;  %v412_v14 = vmul.f32 %v2009_v34, %v2400_v19  ;;  %2036 = vpow2.f32 %v1598_v7  ;;  %v2509_v19 = vadd.f32 %v1060_v61, %v2368_v60 }
 0x187   : > { %v2013_v48 = vpop.eup %2012  ;;  %v1710_v1 = vpack.c.bf16 %v529_v37, %v528_v35  ;;  %v527_v15 = vmul.f32 %v2011_v41, %v2403_v20  ;;  %2038 = vpow2.f32 %v1612_v10  ;;  %v1639_v20 = vmul.f32 -1.442695, %v2487_v24 }
 0x188   : > { %v2015_v52 = vpop.eup %2014  ;;  %1772 = vst [vmem:[%s2504_s7 + $0x40] sm:$0xff] %v1700_v43   ;;  %v1695_v3 = vpack.c.bf16 %v412_v14, %v411_v2  ;;  %2040 = vpow2.f32 %v1596_v62  ;;  %v642_v5 = vmul.f32 %v2013_v48, %v2409_v25  ;;  %v1624_v7 = vmul.f32 -1.442695, %v2509_v19 }
 0x189   : > { %v2017_v9 = vpop.eup %2016  ;;  %1774 = vst [vmem:[%s2504_s7 + $0x48] sm:$0xff] %v1710_v1   ;;  %v1705_v53 = vpack.c.bf16 %v527_v15, %v526_v51  ;;  %2042 = vpow2.f32 %v1610_v13  ;;  %v756_v10 = vmul.f32 %v2015_v52, %v2412_v27 }
 0x18a   : > { %v2019_v57 = vpop.eup %2018  ;;  %1696 = vst [vmem:[%s2504_s7] sm:$0xff] %v1695_v3   ;;  %2044 = vpow2.f32 %v1625_v16  ;;  %v640_v13 = vmul.f32 %v2017_v9, %v2416_v30 }
 0x18b   : > { %v2021_v59 = vpop.eup %2020  ;;  %1773 = vst [vmem:[%s2504_s7 + $0x8] sm:$0xff] %v1705_v53   ;;  %2046 = vpow2.f32 %v1641_v22  ;;  %v754_v17 = vmul.f32 %v2019_v57, %v2420_v33 }
 0x18c   : > { %v2023_v4 = vpop.eup %2022  ;;  %v643_v6 = vmul.f32 %v2021_v59, %v2424_v36  ;;  %2048 = vpow2.f32 %v1623_v8 }
 0x18d   : > { %v2025_v60 = vpop.eup %2024  ;;  %v757_v11 = vmul.f32 %v2023_v4, %v2428_v39  ;;  %2050 = vpow2.f32 %v1639_v20 }
 0x18e   : > { %v2027_v62 = vpop.eup %2026  ;;  %v1720_v16 = vpack.c.bf16 %v643_v6, %v642_v5  ;;  %v641_v25 = vmul.f32 %v2025_v60, %v2432_v42  ;;  %2052 = vpow2.f32 %v1626_v58 }
 0x18f   : > { %v2029_v36 = vpop.eup %2028  ;;  %v1730_v18 = vpack.c.bf16 %v757_v11, %v756_v10  ;;  %v755_v27 = vmul.f32 %v2027_v62, %v2436_v45  ;;  %2054 = vpow2.f32 %v1642_v0 }
 0x190   : > { %v2031_v39 = vpop.eup %2030  ;;  %1776 = vst [vmem:[%s2504_s7 + $0x50] sm:$0xff] %v1720_v16   ;;  %v1715_v22 = vpack.c.bf16 %v641_v25, %v640_v13  ;;  %v858_v26 = vadd.f32 1.0, %v2029_v36  ;;  %2056 = vpow2.f32 %v1624_v7 }
 0x191   : > { %v2033_v28 = vpop.eup %2032  ;;  %1778 = vst [vmem:[%s2504_s7 + $0x58] sm:$0xff] %v1730_v18   ;;  %v1725_v30 = vpack.c.bf16 %v755_v27, %v754_v17  ;;  %v972_v29 = vadd.f32 1.0, %v2031_v39  ;;  %2058 = vpow2.f32 %v1640_v12 }
 0x192   : > { %v2035_v42 = vpop.eup %2034  ;;  %1775 = vst [vmem:[%s2504_s7 + $0x10] sm:$0xff] %v1715_v22   ;;  %2060 = vrcp.f32 %v858_v26  ;;  %v856_v34 = vadd.f32 1.0, %v2033_v28 }
 0x193   : > { %v2037_v33 = vpop.eup %2036  ;;  %1777 = vst [vmem:[%s2504_s7 + $0x18] sm:$0xff] %v1725_v30   ;;  %2062 = vrcp.f32 %v972_v29  ;;  %v970_v45 = vadd.f32 1.0, %v2035_v42 }
 0x194   : > { %v2039_v35 = vpop.eup %2038  ;;  %2064 = vrcp.f32 %v856_v34  ;;  %v859_v37 = vadd.f32 1.0, %v2037_v33 }
 0x195   : > { %v2041_v61 = vpop.eup %2040  ;;  %2066 = vrcp.f32 %v970_v45  ;;  %v973_v41 = vadd.f32 1.0, %v2039_v35 }
 0x196   : > { %v2043_v2 = vpop.eup %2042  ;;  %2068 = vrcp.f32 %v859_v37  ;;  %v857_v43 = vadd.f32 1.0, %v2041_v61 }
 0x197   : > { %v2045_v14 = vpop.eup %2044  ;;  %2070 = vrcp.f32 %v973_v41  ;;  %v971_v47 = vadd.f32 1.0, %v2043_v2 }
 0x198   : > { %v2047_v48 = vpop.eup %2046  ;;  %2072 = vrcp.f32 %v857_v43  ;;  %v1086_v51 = vadd.f32 1.0, %v2045_v14 }
 0x199   : > { %v2049_v1 = vpop.eup %2048  ;;  %2074 = vrcp.f32 %v971_v47  ;;  %v1211_v15 = vadd.f32 1.0, %v2047_v48  ;;  %v1305_v47 = vld [vmem:[%s2504_s7 + $0x40] sm:$0xff] (%p2221_p5)   ;;  %v1309_v48 = vld [vmem:[%s2504_s7 + $0x48] sm:$0xff] (%p2221_p5)  }
 0x19a   : > { %v2051_v52 = vpop.eup %2050  ;;  %2076 = vrcp.f32 %v1086_v51  ;;  %v1084_v3 = vadd.f32 1.0, %v2049_v1  ;;  %v1313_v51 = vld [vmem:[%s2504_s7 + $0x50] sm:$0xff] (%p2221_p5)   ;;  %v1317_v1 = vld [vmem:[%s2504_s7 + $0x58] sm:$0xff] (%p2221_p5)   ;;  %1306 = vst [vmem:[%s1256_s18 + $0xc0] sm:$0xff] (%p2221_p5), %v1305_v47   ;;  %1310 = vst [vmem:[%s1256_s18 + $0xc8] sm:$0xff] (%p2221_p5), %v1309_v48  }
 0x19b   : > { %v2053_v8 = vpop.eup %2052  ;;  %2078 = vrcp.f32 %v1211_v15  ;;  %v1209_v9 = vadd.f32 1.0, %v2051_v52  ;;  %1314 = vst [vmem:[%s1256_s18 + $0xd0] sm:$0xff] (%p2221_p5), %v1313_v51   ;;  %1318 = vst [vmem:[%s1256_s18 + $0xd8] sm:$0xff] (%p2221_p5), %v1317_v1  }
 0x19c   : > { %v2055_v53 = vpop.eup %2054  ;;  %2080 = vrcp.f32 %v1084_v3  ;;  %v1087_v20 = vadd.f32 1.0, %v2053_v8 }
 0x19d   : > { %v2057_v57 = vpop.eup %2056  ;;  %2082 = vrcp.f32 %v1209_v9  ;;  %v1212_v58 = vadd.f32 1.0, %v2055_v53 }
 0x19e   : > { %v2059_v59 = vpop.eup %2058  ;;  %2084 = vrcp.f32 %v1087_v20  ;;  %v1085_v0 = vadd.f32 1.0, %v2057_v57 }
 0x19f   : > { %v2061_v4 = vpop.eup %2060  ;;  %2086 = vrcp.f32 %v1212_v58  ;;  %v1210_v5 = vadd.f32 1.0, %v2059_v59 }
 0x1a0   : > { %v2063_v6 = vpop.eup %2062  ;;  %2088 = vrcp.f32 %v1085_v0  ;;  %v870_v12 = vmul.f32 %v2061_v4, %v2441_v21 }
 0x1a1   : > { %v2065_v7 = vpop.eup %2064  ;;  %2090 = vrcp.f32 %v1210_v5  ;;  %v984_v16 = vmul.f32 %v2063_v6, %v2444_v32 }
 0x1a2   : > { %v2067_v60 = vpop.eup %2066  ;;  %v868_v17 = vmul.f32 %v2065_v7, %v2448_v40 }
 0x1a3   : > { %v2069_v10 = vpop.eup %2068  ;;  %v982_v22 = vmul.f32 %v2067_v60, %v2451_v44 }
 0x1a4   : > { %v2071_v11 = vpop.eup %2070  ;;  %v871_v62 = vmul.f32 %v2069_v10, %v2454_v46 }
 0x1a5   : > { %v2073_v13 = vpop.eup %2072  ;;  %v985_v25 = vmul.f32 %v2071_v11, %v2458_v49 }
 0x1a6   : > { %v2075_v36 = vpop.eup %2074  ;;  %v1740_v18 = vpack.c.bf16 %v871_v62, %v870_v12  ;;  %v869_v27 = vmul.f32 %v2073_v13, %v2461_v50 }
 0x1a7   : > { %v2077_v39 = vpop.eup %2076  ;;  %v1750_v21 = vpack.c.bf16 %v985_v25, %v984_v16  ;;  %v983_v46 = vmul.f32 %v2075_v36, %v2464_v54 }
 0x1a8   : > { %v2079_v26 = vpop.eup %2078  ;;  %1780 = vst [vmem:[%s2504_s7 + $0x60] sm:$0xff] %v1740_v18   ;;  %v1735_v28 = vpack.c.bf16 %v869_v27, %v868_v17  ;;  %v1098_v50 = vmul.f32 %v2077_v39, %v2467_v55 }
 0x1a9   : > { %v2081_v32 = vpop.eup %2080  ;;  %1782 = vst [vmem:[%s2504_s7 + $0x68] sm:$0xff] %v1750_v21   ;;  %v1745_v49 = vpack.c.bf16 %v983_v46, %v982_v22  ;;  %v1223_v42 = vmul.f32 %v2079_v26, %v2471_v63  ;;  %v1273_v63 = vld [vmem:[%s2504_s7] sm:$0xff] (%p2221_p5)  }
 0x1aa   : > { %v2083_v30 = vpop.eup %2082  ;;  %1779 = vst [vmem:[%s2504_s7 + $0x20] sm:$0xff] %v1735_v28   ;;  %v1096_v45 = vmul.f32 %v2081_v32, %v2484_v23  ;;  %v1277_v23 = vld [vmem:[%s2504_s7 + $0x8] sm:$0xff] (%p2221_p5)   ;;  %1274 = vst [vmem:[%s1256_s18] sm:$0xff] (%p2221_p5), %v1273_v63  }
 0x1ab   : > { %v2085_v40 = vpop.eup %2084  ;;  %1781 = vst [vmem:[%s2504_s7 + $0x28] sm:$0xff] %v1745_v49   ;;  %v1221_v61 = vmul.f32 %v2083_v30, %v2487_v24  ;;  %v1281_v24 = vld [vmem:[%s2504_s7 + $0x10] sm:$0xff] (%p2221_p5)   ;;  %1278 = vst [vmem:[%s1256_s18 + $0x8] sm:$0xff] (%p2221_p5), %v1277_v23  }
 0x1ac   : > { %v2087_v29 = vpop.eup %2086  ;;  %v1099_v44 = vmul.f32 %v2085_v40, %v2492_v31  ;;  %1282 = vst [vmem:[%s1256_s18 + $0x10] sm:$0xff] (%p2221_p5), %v1281_v24  }
 0x1ad   : > { %v2089_v54 = vpop.eup %2088  ;;  %v1224_v34 = vmul.f32 %v2087_v29, %v2497_v38  ;;  %v1285_v38 = vld [vmem:[%s2504_s7 + $0x18] sm:$0xff] (%p2221_p5)  }
 0x1ae   : > { %v2091_v33 = vpop.eup %2090  ;;  %v1760_v35 = vpack.c.bf16 %v1099_v44, %v1098_v50  ;;  %v1097_v37 = vmul.f32 %v2089_v54, %v2509_v19  ;;  %1286 = vst [vmem:[%s1256_s18 + $0x18] sm:$0xff] (%p2221_p5), %v1285_v38  }
 0x1af   : > { %v1770_v41 = vpack.c.bf16 %v1224_v34, %v1223_v42  ;;  %v1222_v55 = vmul.f32 %v2091_v33, %v2514_v56  ;;  %1251 = sbr.rel (!%p2221_p5) target bundleno = 444 (0x1bc), region = 40  ;;  %v1321_v15 = vld [vmem:[%s2504_s7 + $0x60] sm:$0xff] (%p2221_p5)  }
 0x1b0   : > { %1784 = vst [vmem:[%s2504_s7 + $0x70] sm:$0xff] %v1760_v35   ;;  %v1755_v2 = vpack.c.bf16 %v1097_v37, %v1096_v45  ;;  %v1325_v52 = vld [vmem:[%s2504_s7 + $0x68] sm:$0xff] (%p2221_p5)   ;;  %1322 = vst [vmem:[%s1256_s18 + $0xe0] sm:$0xff] (%p2221_p5), %v1321_v15  }
 0x1b1   : > { %1786 = vst [vmem:[%s2504_s7 + $0x78] sm:$0xff] %v1770_v41   ;;  %v1765_v31 = vpack.c.bf16 %v1222_v55, %v1221_v61  ;;  %v1289_v19 = vld [vmem:[%s2504_s7 + $0x20] sm:$0xff] (%p2221_p5)   ;;  %1326 = vst [vmem:[%s1256_s18 + $0xe8] sm:$0xff] (%p2221_p5), %v1325_v52  }
 0x1b2   : > { %1783 = vst [vmem:[%s2504_s7 + $0x30] sm:$0xff] %v1755_v2   ;;  %v1293_v56 = vld [vmem:[%s2504_s7 + $0x28] sm:$0xff] (%p2221_p5)   ;;  %1290 = vst [vmem:[%s1256_s18 + $0x20] sm:$0xff] (%p2221_p5), %v1289_v19  }
 0x1b3   : > { %1785 = vst [vmem:[%s2504_s7 + $0x38] sm:$0xff] %v1765_v31   ;;  %1294 = vst [vmem:[%s1256_s18 + $0x28] sm:$0xff] (%p2221_p5), %v1293_v56  }
 0x1b7   : > { %v1329_v3 = vld [vmem:[%s2504_s7 + $0x70] sm:$0xff]  }
 0x1b8   : > { %1330 = vst [vmem:[%s1256_s18 + $0xf0] sm:$0xff] %v1329_v3   ;;  %v1333_v8 = vld [vmem:[%s2504_s7 + $0x78] sm:$0xff]  }
 0x1b9   : > { %v1297_v43 = vld [vmem:[%s2504_s7 + $0x30] sm:$0xff]   ;;  %1334 = vst [vmem:[%s1256_s18 + $0xf8] sm:$0xff] %v1333_v8  }
 0x1ba   : > { %v1301_v14 = vld [vmem:[%s2504_s7 + $0x38] sm:$0xff]   ;;  %1298 = vst [vmem:[%s1256_s18 + $0x30] sm:$0xff] %v1297_v43  }
 0x1bb   : > { %1302 = vst [vmem:[%s1256_s18 + $0x38] sm:$0xff] %v1301_v14  }
 0x1bc PF: > { %s14_s21 = sadd.s32 1, %s2146_s21   ;;  %s2608_s15 = smov %s2126_s16 }
 0x1bd   : > { %p11_p12 = scmp.ge.s32.totalorder %s14_s21, 8   ;;  %s2609_s16 = smov %s2232_s30 }
 0x1be   : > { %s2610_s17 = smov %s2138_s19  ;;  %s2611_s18 = smov %s2142_s20 }
 0x1bf   : > { %s2612_s19 = smov %s2615_s22  ;;  %s2613_s20 = smov %s2619_s23 }
 0x1c0   :  { %13 = sbr.rel (!%p11_p12) target bundleno = 4 (0x4), region = 111 }

</bundles_post_ra>
